<compile_context>
chip_gen: v6e
topology: v6e:2x2x1
jax: 0.10.0
libtpu: 0.0.40
codegen_flags: <defaults>
</compile_context>

<pallas_src>
import functools

import jax
import jax.numpy as jnp
from jax.experimental import pallas as pl
from jax.experimental.pallas import tpu as pltpu


# ---------------------------------------------------------------------------
# Fused recurrence kernel: one grid step == one GRU time step.
#   r = sigmoid(gx_r + gh_r);  z = sigmoid(gx_z + gh_z)
#   n = tanh(gx_n + r * gh_n); h' = n + z*(h - n)   (== (1-z)*n + z*h)
#   x' = sum(h' * wo) + bo                          (fc_out)
# ---------------------------------------------------------------------------
def _gru_fused_kernel(gx_ref, wxn_ref, wh_ref, bh_ref, wo_ref, bo_ref,
                      preds_ref, hn_ref, xn_ref, *, hid_dim):
    # gx_ref  : [1, N, GP]  static input-side pre-activations for this step
    # wxn_ref : [1, 1, GP]  xn row of Wx (phase-selected enc/dec)
    # wh_ref  : [1, H, GP]  hidden-side gate weights (r|z|n concat, zero-pad)
    # bh_ref  : [1, 1, GP]
    # wo_ref  : [1, 1, H]   fc_out weight as a row
    # bo_ref  : [1, 1, 1]
    # preds_ref: [1, N, 1]  per-step fc_out output
    # hn_ref  : VMEM scratch [N, H]  (persists across the whole grid)
    # xn_ref  : VMEM scratch [N, 1]  (persists across the whole grid)
    t = pl.program_id(0)
    H = hid_dim

    @pl.when(t == 0)
    def _():
        hn_ref[...] = jnp.zeros_like(hn_ref)
        xn_ref[...] = jnp.zeros_like(xn_ref)

    h = hn_ref[...]                                       # [N, H] f32
    xn = xn_ref[...]                                      # [N, 1] f32

    # input-side gates: hoisted static part + rank-1 xn contribution (VPU)
    gx = gx_ref[0] + xn * wxn_ref[0]                      # [N, GP]
    # hidden-side gates: single MXU matmul, f32 accumulate
    gh = jnp.dot(h, wh_ref[0],
                 preferred_element_type=jnp.float32) + bh_ref[0]

    r = jax.nn.sigmoid(gx[:, 0:H] + gh[:, 0:H])
    z = jax.nn.sigmoid(gx[:, H:2 * H] + gh[:, H:2 * H])
    n = jnp.tanh(gx[:, 2 * H:3 * H] + r * gh[:, 2 * H:3 * H])
    hy = n + z * (h - n)                                  # [N, H]

    # fc_out as a lane reduction (XLU) instead of a width-1 MXU matmul
    x_out = jnp.sum(hy * wo_ref[0], axis=-1, keepdims=True) + bo_ref[0]

    hn_ref[...] = hy
    xn_ref[...] = x_out
    preds_ref[0] = x_out


def _gru_recurrence(gx_static, wxn, wh, bh, wo, bo, *, N, H, GP, hist_len, T):
    """Run the full encoder+decoder recurrence inside one pallas_call."""

    def phase(t):                      # 0 = encoder weights, 1 = decoder weights
        return jnp.where(t >= hist_len, 1, 0)

    grid_spec = pltpu.PrefetchScalarGridSpec(
        num_scalar_prefetch=0,
        grid=(T,),
        in_specs=[
            pl.BlockSpec((1, N, GP), lambda t: (t, 0, 0)),          # gx_static
            pl.BlockSpec((1, 1, GP), lambda t: (phase(t), 0, 0)),   # wxn
            pl.BlockSpec((1, H, GP), lambda t: (phase(t), 0, 0)),   # wh
            pl.BlockSpec((1, 1, GP), lambda t: (phase(t), 0, 0)),   # bh
            pl.BlockSpec((1, 1, H),  lambda t: (phase(t), 0, 0)),   # wo
            pl.BlockSpec((1, 1, 1),  lambda t: (phase(t), 0, 0)),   # bo
        ],
        out_specs=pl.BlockSpec((1, N, 1), lambda t: (t, 0, 0)),
        scratch_shapes=[pltpu.VMEM((N, H), jnp.float32),            # hn
                        pltpu.VMEM((N, 1), jnp.float32)],           # xn
    )
    return pl.pallas_call(
        functools.partial(_gru_fused_kernel, hid_dim=H),
        out_shape=jax.ShapeDtypeStruct((T, N, 1), jnp.float32),
        grid_spec=grid_spec,
        compiler_params=pltpu.CompilerParams(
            dimension_semantics=("arbitrary",)),   # T is a true recurrence axis
    )(gx_static, wxn, wh, bh, wo, bo)


# ---------------------------------------------------------------------------
# Parameters (deterministic, synthetic).  Gate weights stored pre-concatenated:
#   wx: [D_in, 3H], wh: [H, 3H]  (gate order r, z, n), wo: [1, H], bo: [1, 1].
# Row 0 of wx corresponds to the xn column (concat order: [xn, ...]).
# ---------------------------------------------------------------------------
def _make_cell_params(key, d_in, hid_dim, emb_dim, num_embeddings):
    ks = jax.random.split(key, 7)
    s = 0.1
    g = 3 * hid_dim
    return {
        "emb": jax.random.normal(ks[0], (num_embeddings, emb_dim), jnp.float32) * s,
        "wx":  jax.random.normal(ks[1], (d_in, g), jnp.float32) * s,
        "bx":  jax.random.normal(ks[2], (1, g), jnp.float32) * s,
        "wh":  jax.random.normal(ks[3], (hid_dim, g), jnp.float32) * s,
        "bh":  jax.random.normal(ks[4], (1, g), jnp.float32) * s,
        "wo":  jax.random.normal(ks[5], (1, hid_dim), jnp.float32) * s,
        "bo":  jax.random.normal(ks[6], (1, 1), jnp.float32) * s,
    }


def make_params(key, in_dim_enc, emb_dim, hid_dim, num_embeddings):
    k_enc, k_dec = jax.random.split(key)
    out_dim = 1
    enc_in = (in_dim_enc - 1) + emb_dim + 2 * out_dim   # [xn, y, Xcont, emb]
    dec_in = emb_dim + out_dim                          # [xn, emb]
    return {
        "enc": _make_cell_params(k_enc, enc_in, hid_dim, emb_dim, num_embeddings),
        "dec": _make_cell_params(k_dec, dec_in, hid_dim, emb_dim, num_embeddings),
    }


# ---------------------------------------------------------------------------
# Forward pass (Encoder -> Decoder), matching the PyTorch module.
# Embedding gather + static input projection are hoisted to one batched XLA
# einsum; the serial recurrence runs entirely inside one Pallas kernel.
# ---------------------------------------------------------------------------
@functools.partial(jax.jit, static_argnames=("batch_size", "city_num", "hid_dim",
                                             "hist_len", "forecast_len"))
def gru_forward(params, X, y, *, batch_size, city_num, hid_dim,
                hist_len, forecast_len):
    B, C, H = batch_size, city_num, hid_dim
    N = B * C
    Np = ((N + 7) // 8) * 8                 # row axis padded to 8 sublanes
    T = hist_len + forecast_len
    H3 = 3 * H
    GP = ((H3 + 127) // 128) * 128          # gate axis padded to 128 lanes

    enc, dec = params["enc"], params["dec"]

    # -------- hoisted xn-independent input-gate pre-activations, all steps ----
    Xe = X[:, :hist_len]                                            # [B,Th,C,F]
    emb_e = jnp.take(enc["emb"], Xe[..., -1].astype(jnp.int32), axis=0)
    stat_e = jnp.concatenate([y[:, :hist_len], Xe[..., :-1], emb_e], axis=-1)
    gx_e = jnp.einsum("btcd,dg->btcg", stat_e, enc["wx"][1:]) + enc["bx"][0]
    gx_e = gx_e.transpose(1, 0, 2, 3).reshape(hist_len, N, H3)

    # NOTE: decoder indexes X[:, i] (i < forecast_len), exactly like the reference.
    Xd = X[:, :forecast_len]
    emb_d = jnp.take(dec["emb"], Xd[..., -1].astype(jnp.int32), axis=0)
    gx_d = jnp.einsum("btce,eg->btcg", emb_d, dec["wx"][1:]) + dec["bx"][0]
    gx_d = gx_d.transpose(1, 0, 2, 3).reshape(forecast_len, N, H3)

    gx_static = jnp.concatenate([gx_e, gx_d], axis=0)               # [T,N,3H]
    gx_static = jnp.pad(gx_static,
                        ((0, 0), (0, Np - N), (0, GP - H3)))        # [T,Np,GP]

    def padg(a):   # zero-pad gate axis to GP (padded lanes never read)
        return jnp.pad(a, ((0, 0), (0, 0), (0, GP - a.shape[-1])))

    wxn = padg(jnp.stack([enc["wx"][0:1], dec["wx"][0:1]], axis=0))  # [2,1,GP]
    wh = padg(jnp.stack([enc["wh"], dec["wh"]], axis=0))             # [2,H,GP]
    bh = padg(jnp.stack([enc["bh"], dec["bh"]], axis=0))             # [2,1,GP]
    wo = jnp.stack([enc["wo"], dec["wo"]], axis=0)                   # [2,1,H]
    bo = jnp.stack([enc["bo"], dec["bo"]], axis=0)                   # [2,1,1]

    preds_all = _gru_recurrence(gx_static, wxn, wh, bh, wo, bo,
                                N=Np, H=H, GP=GP, hist_len=hist_len, T=T)

    preds = preds_all[hist_len:, :N].reshape(forecast_len, B, C, 1)
    return preds.transpose(1, 0, 2, 3)                               # [B,Tf,C,1]


# ---------------------------------------------------------------------------
# Pure-JAX step-by-step reference (mirrors the PyTorch module exactly).
# ---------------------------------------------------------------------------
@functools.partial(jax.jit, static_argnames=("batch_size", "city_num", "hid_dim",
                                             "hist_len", "forecast_len"))
def gru_reference(params, X, y, *, batch_size, city_num, hid_dim,
                  hist_len, forecast_len):
    B, C, H = batch_size, city_num, hid_dim
    N = B * C
    enc, dec = params["enc"], params["dec"]

    def cell(x, h, p):
        gx = x @ p["wx"] + p["bx"]
        gh = h @ p["wh"] + p["bh"]
        r = jax.nn.sigmoid(gx[:, :H] + gh[:, :H])
        z = jax.nn.sigmoid(gx[:, H:2 * H] + gh[:, H:2 * H])
        n = jnp.tanh(gx[:, 2 * H:] + r * gh[:, 2 * H:])
        hy = n + z * (h - n)
        xo = hy @ p["wo"].T + p["bo"]
        return hy, xo

    hn = jnp.zeros((N, H), jnp.float32)
    xn = jnp.zeros((B, C, 1), jnp.float32)
    for i in range(hist_len):
        emb = enc["emb"][X[:, i, :, -1].astype(jnp.int32)]
        xcat = jnp.concatenate([xn, y[:, i], X[:, i, :, :-1], emb],
                               axis=-1).reshape(N, -1)
        hn, xo = cell(xcat, hn, enc)
        xn = xo.reshape(B, C, 1)
    preds = []
    for i in range(forecast_len):
        emb = dec["emb"][X[:, i, :, -1].astype(jnp.int32)]
        xcat = jnp.concatenate([xn, emb], axis=-1).reshape(N, -1)
        hn, xo = cell(xcat, hn, dec)
        xn = xo.reshape(B, C, 1)
        preds.append(xn)
    return jnp.stack(preds, axis=1)


# ---------------------------------------------------------------------------
if __name__ == "__main__":
    jax.config.update("jax_default_matmul_precision", "highest")

    batch_size = 2
    city_num = 8
    in_dim_enc = 5            # num_features (last feature = embedding index)
    emb_dim = 8
    hid_dim = 32
    num_embeddings = 10
    hist_len = 4
    forecast_len = 3
    T = hist_len + forecast_len

    key = jax.random.PRNGKey(0)
    k_params, k_x, k_y, k_id = jax.random.split(key, 4)

    params = make_params(k_params, in_dim_enc, emb_dim, hid_dim, num_embeddings)

    X_cont = jax.random.normal(k_x, (batch_size, T, city_num, in_dim_enc - 1),
                               jnp.float32)
    X_ids = jax.random.randint(k_id, (batch_size, T, city_num, 1),
                               0, num_embeddings).astype(jnp.float32)
    X = jnp.concatenate([X_cont, X_ids], axis=-1)
    y = jax.random.normal(k_y, (batch_size, T, city_num, 1), jnp.float32)

    preds = gru_forward(params, X, y,
                        batch_size=batch_size, city_num=city_num,
                        hid_dim=hid_dim, hist_len=hist_len,
                        forecast_len=forecast_len)
    preds = jax.block_until_ready(preds)

    ref = gru_reference(params, X, y,
                        batch_size=batch_size, city_num=city_num,
                        hid_dim=hid_dim, hist_len=hist_len,
                        forecast_len=forecast_len)
    ref = jax.block_until_ready(ref)

    assert preds.shape == (batch_size, forecast_len, city_num, 1)
    assert bool(jnp.all(jnp.isfinite(preds)))
    max_err = float(jnp.max(jnp.abs(preds - ref)))
    assert max_err < 5e-3, f"mismatch vs reference: max abs err = {max_err}"
    print("KERNEL_OK")
</pallas_src>

<mosaic_0001>
module attributes {stable_mosaic.version = 11 : i64} {
  func.func @_gru_fused_kernel(%arg0: i32, %arg1: memref<1x16x128xf32, #tpu.memory_space<vmem>>, %arg2: memref<1x1x128xf32, #tpu.memory_space<vmem>>, %arg3: memref<1x32x128xf32, #tpu.memory_space<vmem>>, %arg4: memref<1x1x128xf32, #tpu.memory_space<vmem>>, %arg5: memref<1x1x32xf32, #tpu.memory_space<vmem>>, %arg6: memref<1x1x1xf32, #tpu.memory_space<vmem>>, %arg7: memref<1x16x1xf32, #tpu.memory_space<vmem>>, %arg8: memref<16x32xf32, #tpu.memory_space<vmem>>, %arg9: memref<16x1xf32, #tpu.memory_space<vmem>>) attributes {dimension_semantics = [#tpu.dimension_semantics<arbitrary>], iteration_bounds = array<i64: 7>, scalar_prefetch = 0 : i64, scratch_operands = 2 : i64, tpu.core_type = #tpu.core_type<tc>, window_params = [{transform_indices = @transform_0, window_bounds = array<i64: 1, 16, 128>}, {transform_indices = @transform_1, window_bounds = array<i64: 1, 1, 128>}, {transform_indices = @transform_2, window_bounds = array<i64: 1, 32, 128>}, {transform_indices = @transform_3, window_bounds = array<i64: 1, 1, 128>}, {transform_indices = @transform_4, window_bounds = array<i64: 1, 1, 32>}, {transform_indices = @transform_5, window_bounds = array<i64: 1, 1, 1>}, {transform_indices = @transform_6, window_bounds = array<i64: 1, 16, 1>}]} {
    %c0_i32 = arith.constant 0 : i32
    %0 = arith.cmpi eq, %arg0, %c0_i32 : i32
    %1 = arith.extui %0 : i1 to i32
    %c0_i32_0 = arith.constant 0 : i32
    %2 = arith.cmpi ne, %1, %c0_i32_0 : i32
    scf.if %2 {
      %cst_32 = arith.constant 0.000000e+00 : f32
      %59 = vector.broadcast %cst_32 : f32 to vector<16x32xf32>
      %c0_33 = arith.constant 0 : index
      %c0_34 = arith.constant 0 : index
      %60 = vector.load %arg8[%c0_33, %c0_34] : memref<16x32xf32, #tpu.memory_space<vmem>>, vector<16x32xf32>
      tpu.vector_store %arg8[%c0_33, %c0_34], %59 {strides = array<i32>} : memref<16x32xf32, #tpu.memory_space<vmem>>, vector<16x32xf32>,
      %cst_35 = arith.constant 0.000000e+00 : f32
      %61 = vector.broadcast %cst_35 : f32 to vector<16x1xf32>
      %c0_36 = arith.constant 0 : index
      %c0_37 = arith.constant 0 : index
      %62 = vector.load %arg9[%c0_36, %c0_37] : memref<16x1xf32, #tpu.memory_space<vmem>>, vector<16x1xf32>
      tpu.vector_store %arg9[%c0_36, %c0_37], %61 {strides = array<i32>} : memref<16x1xf32, #tpu.memory_space<vmem>>, vector<16x1xf32>,
    } else {
    }
    %c0 = arith.constant 0 : index
    %c0_1 = arith.constant 0 : index
    %3 = vector.load %arg8[%c0, %c0_1] : memref<16x32xf32, #tpu.memory_space<vmem>>, vector<16x32xf32>
    %c0_2 = arith.constant 0 : index
    %c0_3 = arith.constant 0 : index
    %4 = vector.load %arg9[%c0_2, %c0_3] : memref<16x1xf32, #tpu.memory_space<vmem>>, vector<16x1xf32>
    %c0_4 = arith.constant 0 : index
    %c0_5 = arith.constant 0 : index
    %c0_6 = arith.constant 0 : index
    %5 = vector.load %arg1[%c0_4, %c0_5, %c0_6] : memref<1x16x128xf32, #tpu.memory_space<vmem>>, vector<1x16x128xf32>
    %6 = vector.shape_cast %5 : vector<1x16x128xf32> to vector<16x128xf32>
    %c0_7 = arith.constant 0 : index
    %c0_8 = arith.constant 0 : index
    %c0_9 = arith.constant 0 : index
    %7 = vector.load %arg2[%c0_7, %c0_8, %c0_9] : memref<1x1x128xf32, #tpu.memory_space<vmem>>, vector<1x1x128xf32>
    %8 = vector.shape_cast %7 : vector<1x1x128xf32> to vector<1x128xf32>
    %9 = vector.broadcast %4 : vector<16x1xf32> to vector<16x128xf32>
    %10 = vector.broadcast %8 : vector<1x128xf32> to vector<16x128xf32>
    %11 = arith.mulf %9, %10 : vector<16x128xf32>
    %12 = arith.addf %6, %11 : vector<16x128xf32>
    %c0_10 = arith.constant 0 : index
    %c0_11 = arith.constant 0 : index
    %c0_12 = arith.constant 0 : index
    %13 = vector.load %arg3[%c0_10, %c0_11, %c0_12] : memref<1x32x128xf32, #tpu.memory_space<vmem>>, vector<1x32x128xf32>
    %14 = vector.shape_cast %13 : vector<1x32x128xf32> to vector<32x128xf32>
    %cst = arith.constant dense<0.000000e+00> : vector<16x128xf32>
    %15 = tpu.matmul %3, %14, %cst {dimension_numbers = #tpu.dot_dimension_numbers<[1], [0], [0], [1], [0, 0, 1, 1], [], []>, precision = #tpu.contract_precision<fp32>} : vector<16x32xf32>, vector<32x128xf32>, vector<16x128xf32> -> vector<16x128xf32>
    %c0_13 = arith.constant 0 : index
    %c0_14 = arith.constant 0 : index
    %c0_15 = arith.constant 0 : index
    %16 = vector.load %arg4[%c0_13, %c0_14, %c0_15] : memref<1x1x128xf32, #tpu.memory_space<vmem>>, vector<1x1x128xf32>
    %17 = vector.shape_cast %16 : vector<1x1x128xf32> to vector<1x128xf32>
    %18 = vector.broadcast %17 : vector<1x128xf32> to vector<16x128xf32>
    %19 = arith.addf %15, %18 : vector<16x128xf32>
    %20 = vector.extract_strided_slice %12 {offsets = [0, 0], sizes = [16, 32], strides = [1, 1]} : vector<16x128xf32> to vector<16x32xf32>
    %21 = vector.extract_strided_slice %19 {offsets = [0, 0], sizes = [16, 32], strides = [1, 1]} : vector<16x128xf32> to vector<16x32xf32>
    %22 = arith.addf %20, %21 : vector<16x32xf32>
    %23 = arith.negf %22 : vector<16x32xf32>
    %24 = math.exp %23 : vector<16x32xf32>
    %cst_16 = arith.constant 1.000000e+00 : f32
    %25 = vector.broadcast %cst_16 : f32 to vector<16x32xf32>
    %26 = arith.addf %25, %24 : vector<16x32xf32>
    %27 = arith.divf %25, %26 : vector<16x32xf32>
    %28 = vector.extract_strided_slice %12 {offsets = [0, 32], sizes = [16, 32], strides = [1, 1]} : vector<16x128xf32> to vector<16x32xf32>
    %29 = vector.extract_strided_slice %19 {offsets = [0, 32], sizes = [16, 32], strides = [1, 1]} : vector<16x128xf32> to vector<16x32xf32>
    %30 = arith.addf %28, %29 : vector<16x32xf32>
    %31 = arith.negf %30 : vector<16x32xf32>
    %32 = math.exp %31 : vector<16x32xf32>
    %cst_17 = arith.constant 1.000000e+00 : f32
    %33 = vector.broadcast %cst_17 : f32 to vector<16x32xf32>
    %34 = arith.addf %33, %32 : vector<16x32xf32>
    %35 = arith.divf %33, %34 : vector<16x32xf32>
    %36 = vector.extract_strided_slice %12 {offsets = [0, 64], sizes = [16, 32], strides = [1, 1]} : vector<16x128xf32> to vector<16x32xf32>
    %37 = vector.extract_strided_slice %19 {offsets = [0, 64], sizes = [16, 32], strides = [1, 1]} : vector<16x128xf32> to vector<16x32xf32>
    %38 = arith.mulf %27, %37 : vector<16x32xf32>
    %39 = arith.addf %36, %38 : vector<16x32xf32>
    %40 = math.tanh %39 : vector<16x32xf32>
    %41 = arith.subf %3, %40 : vector<16x32xf32>
    %42 = arith.mulf %35, %41 : vector<16x32xf32>
    %43 = arith.addf %40, %42 : vector<16x32xf32>
    %c0_18 = arith.constant 0 : index
    %c0_19 = arith.constant 0 : index
    %c0_20 = arith.constant 0 : index
    %44 = vector.load %arg5[%c0_18, %c0_19, %c0_20] : memref<1x1x32xf32, #tpu.memory_space<vmem>>, vector<1x1x32xf32>
    %45 = vector.shape_cast %44 : vector<1x1x32xf32> to vector<1x32xf32>
    %46 = vector.broadcast %45 : vector<1x32xf32> to vector<16x32xf32>
    %47 = arith.mulf %43, %46 : vector<16x32xf32>
    %cst_21 = arith.constant dense<0.000000e+00> : vector<16xf32>
    %48 = vector.multi_reduction <add>, %47, %cst_21 [1] : vector<16x32xf32> to vector<16xf32>
    %49 = vector.shape_cast %48 : vector<16xf32> to vector<16x1xf32>
    %c0_22 = arith.constant 0 : index
    %c0_23 = arith.constant 0 : index
    %c0_24 = arith.constant 0 : index
    %50 = vector.load %arg6[%c0_22, %c0_23, %c0_24] : memref<1x1x1xf32, #tpu.memory_space<vmem>>, vector<1x1x1xf32>
    %51 = vector.shape_cast %50 : vector<1x1x1xf32> to vector<1x1xf32>
    %52 = vector.broadcast %51 : vector<1x1xf32> to vector<16x1xf32>
    %53 = arith.addf %49, %52 : vector<16x1xf32>
    %c0_25 = arith.constant 0 : index
    %c0_26 = arith.constant 0 : index
    %54 = vector.load %arg8[%c0_25, %c0_26] : memref<16x32xf32, #tpu.memory_space<vmem>>, vector<16x32xf32>
    tpu.vector_store %arg8[%c0_25, %c0_26], %43 {strides = array<i32>} : memref<16x32xf32, #tpu.memory_space<vmem>>, vector<16x32xf32>,
    %c0_27 = arith.constant 0 : index
    %c0_28 = arith.constant 0 : index
    %55 = vector.load %arg9[%c0_27, %c0_28] : memref<16x1xf32, #tpu.memory_space<vmem>>, vector<16x1xf32>
    tpu.vector_store %arg9[%c0_27, %c0_28], %53 {strides = array<i32>} : memref<16x1xf32, #tpu.memory_space<vmem>>, vector<16x1xf32>,
    %c0_29 = arith.constant 0 : index
    %c0_30 = arith.constant 0 : index
    %c0_31 = arith.constant 0 : index
    %56 = vector.load %arg7[%c0_29, %c0_30, %c0_31] : memref<1x16x1xf32, #tpu.memory_space<vmem>>, vector<1x16x1xf32>
    %57 = vector.shape_cast %56 : vector<1x16x1xf32> to vector<16x1xf32>
    %58 = vector.shape_cast %53 : vector<16x1xf32> to vector<1x16x1xf32>
    tpu.vector_store %arg7[%c0_29, %c0_30, %c0_31], %58 {strides = array<i32>} : memref<1x16x1xf32, #tpu.memory_space<vmem>>, vector<1x16x1xf32>,
    return
  }
  func.func @transform_0(%arg0: i32) -> (i32, i32, i32) {
    %c0_i32 = arith.constant 0 : i32
    %c0_i32_0 = arith.constant 0 : i32
    %c0_i32_1 = arith.constant 0 : i32
    return %arg0, %c0_i32, %c0_i32_0 : i32, i32, i32
  }
  func.func @transform_1(%arg0: i32) -> (i32, i32, i32) {
    %c4_i32 = arith.constant 4 : i32
    %0 = arith.cmpi sge, %arg0, %c4_i32 : i32
    %c1_i32 = arith.constant 1 : i32
    %c0_i32 = arith.constant 0 : i32
    %1 = arith.select %0, %c1_i32, %c0_i32 : i32
    %c0_i32_0 = arith.constant 0 : i32
    %c0_i32_1 = arith.constant 0 : i32
    %c0_i32_2 = arith.constant 0 : i32
    return %1, %c0_i32_0, %c0_i32_1 : i32, i32, i32
  }
  func.func @transform_2(%arg0: i32) -> (i32, i32, i32) {
    %c4_i32 = arith.constant 4 : i32
    %0 = arith.cmpi sge, %arg0, %c4_i32 : i32
    %c1_i32 = arith.constant 1 : i32
    %c0_i32 = arith.constant 0 : i32
    %1 = arith.select %0, %c1_i32, %c0_i32 : i32
    %c0_i32_0 = arith.constant 0 : i32
    %c0_i32_1 = arith.constant 0 : i32
    %c0_i32_2 = arith.constant 0 : i32
    return %1, %c0_i32_0, %c0_i32_1 : i32, i32, i32
  }
  func.func @transform_3(%arg0: i32) -> (i32, i32, i32) {
    %c4_i32 = arith.constant 4 : i32
    %0 = arith.cmpi sge, %arg0, %c4_i32 : i32
    %c1_i32 = arith.constant 1 : i32
    %c0_i32 = arith.constant 0 : i32
    %1 = arith.select %0, %c1_i32, %c0_i32 : i32
    %c0_i32_0 = arith.constant 0 : i32
    %c0_i32_1 = arith.constant 0 : i32
    %c0_i32_2 = arith.constant 0 : i32
    return %1, %c0_i32_0, %c0_i32_1 : i32, i32, i32
  }
  func.func @transform_4(%arg0: i32) -> (i32, i32, i32) {
    %c4_i32 = arith.constant 4 : i32
    %0 = arith.cmpi sge, %arg0, %c4_i32 : i32
    %c1_i32 = arith.constant 1 : i32
    %c0_i32 = arith.constant 0 : i32
    %1 = arith.select %0, %c1_i32, %c0_i32 : i32
    %c0_i32_0 = arith.constant 0 : i32
    %c0_i32_1 = arith.constant 0 : i32
    %c0_i32_2 = arith.constant 0 : i32
    return %1, %c0_i32_0, %c0_i32_1 : i32, i32, i32
  }
  func.func @transform_5(%arg0: i32) -> (i32, i32, i32) {
    %c4_i32 = arith.constant 4 : i32
    %0 = arith.cmpi sge, %arg0, %c4_i32 : i32
    %c1_i32 = arith.constant 1 : i32
    %c0_i32 = arith.constant 0 : i32
    %1 = arith.select %0, %c1_i32, %c0_i32 : i32
    %c0_i32_0 = arith.constant 0 : i32
    %c0_i32_1 = arith.constant 0 : i32
    %c0_i32_2 = arith.constant 0 : i32
    return %1, %c0_i32_0, %c0_i32_1 : i32, i32, i32
  }
  func.func @transform_6(%arg0: i32) -> (i32, i32, i32) {
    %c0_i32 = arith.constant 0 : i32
    %c0_i32_0 = arith.constant 0 : i32
    %c0_i32_1 = arith.constant 0 : i32
    return %arg0, %c0_i32, %c0_i32_0 : i32, i32, i32
  }
}

</mosaic_0001>

<bundles_post_ra>
// kernel: gru_forward.1
= control target key start
LH: loop header
LB: loop body
LE: loop exit
PB: predicated region body
PF: predicated region fallthrough
CT: control target
= control target key end

     0   :  { %s1396_s21 = smov 0   ;;  %s1536_s0 = inlined_call_operand.vmem [shape: f32[7,16,128], index: 0, kind: input, shape index: {}]   ;;  %s1537_s1 = inlined_call_operand.vmem [shape: f32[2,1,128], index: 1, kind: input, shape index: {}]   ;;  %s1538_s2 = inlined_call_operand.vmem [shape: f32[2,32,128], index: 2, kind: input, shape index: {}]   ;;  %s1539_s3 = inlined_call_operand.vmem [shape: f32[2,1,128], index: 3, kind: input, shape index: {}]   ;;  %s1540_s4 = inlined_call_operand.vmem [shape: f32[2,1,32], index: 4, kind: input, shape index: {}]   ;;  %s1541_s5 = inlined_call_operand.vmem [shape: f32[2,1,1], index: 5, kind: input, shape index: {}]   ;;  %s1542_s6 = inlined_call_operand.vmem [shape: f32[7,16,1], index: 6, kind: output, shape index: {}]  }
   0x1 LB: > { %s1199_s22 = sadd.s32 4294967295, %s1355_s21   ;;  %p1203_p0 = scmp.ge.s32.totalorder %s1355_s21, 1  ;;  %s1355_s21 = sphi %s1396_s21, %s16_s21  }
   0x2   : > { %p294_p1 = scmp.lt.s32.totalorder %s1355_s21, 8 }
   0x4   : > { %p295_p2 = pnand %p1203_p0, %p294_p1 }
   0x5   : > { %p351_p3 = scmp.lt.s32.totalorder (!%p295_p2), %s1199_s22, 6  ;;  %p356_p4 = scmp.ge.s32.totalorder (!%p295_p2), %s1199_s22, 4 }
   0x6   : > { %298 = sbr.rel (%p295_p2) target bundleno = 1125 (0x465), region = 44  ;;  %p1210_p6 = scmp.ne.s32.totalorder (!%p295_p2), %s1199_s22, 0 }
   0xb   : > { %s352_s23 = scalar_select %p351_p3, %s1199_s22, 6 }
   0xc   : > { %s357_s24 = scalar_select %p356_p4, 1, 0 }
   0xd   : > { %s1219_s25 = sshll.u32 %s352_s23, 4 }
   0xe   : > { %s1407_s28 = scalar_lea.vmem %s1536_s0, %s1219_s25  ;;  %p358_p5 = scmp.lt.s32.totalorder %s357_s24, 1 }
   0xf   : > { %s1412_s7 = scalar_lea.vmem %s1542_s6, %s1219_s25  ;;  %401 = sbr.rel (%p1210_p6) target bundleno = 23 (0x17), region = 48 }
  0x10   : > { %s1544_s24 = smov (!%p358_p5, %s357_s24), 1 }
  0x11   : > { %s360_s10 = scalar_lea.vmem %s1537_s1, %s1544_s24  ;;  %s1220_s11 = sshll.u32 %s1544_s24, 5 }
  0x12   : > { %s369_s14 = scalar_lea.vmem %s1538_s2, %s1220_s11  ;;  %s376_s17 = scalar_lea.vmem %s1539_s3, %s1544_s24 }
  0x13   : > { %s383_s20 = scalar_lea.vmem %s1540_s4, %s1544_s24  ;;  %s390_s26 = scalar_lea.vmem %s1541_s5, %s1544_s24 }
  0x14   : > { %vm402_vm0 = vcmask 261120   ;;  %vm405_vm1 = vcmask 7168   ;;  %v1357_v0 = vmov 0.0  }
  0x15   : > { %403 = vst.msk [vmem:[#allocation2] sm:$0xff] %vm402_vm0, %v1357_v0  ;;  %404 = vst.msk [vmem:[#allocation2 + $0x8] sm:$0xff] %vm402_vm0, %v1357_v0 }
  0x16   : > { %406 = vst.msk [vmem:[#allocation3] sm:$0xff] %vm405_vm1, %v1357_v0  ;;  %407 = vst.msk [vmem:[#allocation3 + $0x8] sm:$0xff] %vm405_vm1, %v1357_v0 }
  0x17 PF: > { %v438_v1 = vld [vmem:[%s369_s14 + $0x18] sm:$0xff]  ;;  %v437_v2 = vld [vmem:[%s369_s14 + $0x10] sm:$0xff]  ;;  %v436_v3 = vld [vmem:[%s369_s14 + $0x8] sm:$0xff]  ;;  %vm446_vm2 = vcmask 261120   ;;  %v1358_v10 = vmov 0   ;;  %s1359_s29 = smov 64  }
  0x18   : > { %v1436_v4 = vand.u32 4294901760, %v438_v1  ;;  %v1438_v5 = vand.u32 4294901760, %v437_v2  ;;  %v1440_v6 = vand.u32 4294901760, %v436_v3  ;;  %v435_v7 = vld [vmem:[%s369_s14] sm:$0xff]  ;;  %1336 = vset.pattern.permute.xlu0 %v1358_v10  ;;  %vm1091_vm3 = vcmask 7168  }
  0x19   : > { %v1446_v11 = vand.u32 4294901760, %v435_v7  ;;  %v1212_v43 = vld [vmem:[%s376_s17] ss:$0 sm:$0xff] }
  0x1a   : > { %1258 = vmatprep.subr.mxu0 %v1436_v4  ;;  %v568_v15 = vsub.f32 %v438_v1, %v1436_v4  ;;  %v575_v17 = vsub.f32 %v437_v2, %v1438_v5  ;;  %v582_v19 = vsub.f32 %v436_v3, %v1440_v6 }
  0x1b   : > { %1259 = vmatpush3.msra.mxu0 %v1436_v4  ;;  %v589_v20 = vsub.f32 %v435_v7, %v1446_v11 }
  0x1c   : > { %v1442_v8 = vld [vmem:[#allocation2] sm:$0xff]  ;;  %v1444_v9 = vld [vmem:[#allocation2 + $0x8] sm:$0xff]  ;;  %1260 = vmatprep.subr.mxu0 %v1438_v5  ;;  %v569_v22 = vand.u32 4294901760, %v568_v15  ;;  %v576_v24 = vand.u32 4294901760, %v575_v17  ;;  %v583_v26 = vand.u32 4294901760, %v582_v19 }
  0x1d   : > { %v448_v12 = vsel %vm446_vm2, %v1442_v8, 0  ;;  %v451_v13 = vsel %vm446_vm2, %v1444_v9, 0  ;;  %v410_v14 = vld [vmem:[#allocation3] sm:$0xff]  ;;  %v411_v21 = vld [vmem:[#allocation3 + $0x8] sm:$0xff]  ;;  %1261 = vmatpush3.msra.mxu0 %v1438_v5  ;;  %v590_v27 = vand.u32 4294901760, %v589_v20 }
  0x1e   : > { %v1454_v16 = vand.u32 4294901760, %v448_v12  ;;  %v1457_v18 = vand.u32 4294901760, %v451_v13  ;;  %417 = vperm.xlu0 %1336, %v410_v14   ;;  %1262 = vmatprep.subr.mxu0 %v1440_v6  ;;  %v570_v28 = vsub.f32 %v568_v15, %v569_v22  ;;  %v577_v30 = vsub.f32 %v575_v17, %v576_v24 }
  0x1f   : > { %1263 = vmatpush3.msra.mxu0 %v1440_v6  ;;  %v584_v32 = vsub.f32 %v582_v19, %v583_v26  ;;  %v591_v33 = vsub.f32 %v589_v20, %v590_v27 }
  0x20   : > { %v523_v23 = vsub.f32 %v448_v12, %v1454_v16  ;;  %v533_v25 = vsub.f32 %v451_v13, %v1457_v18  ;;  %1277 = vmatprep.mubr.f32.mxu1 %v1454_v16  ;;  %1264 = vmatprep.subr.mxu0 %v1446_v11  ;;  %v571_v34 = vand.u32 4294901760, %v570_v28  ;;  %v578_v36 = vand.u32 4294901760, %v577_v30  ;;  %v413_v12 = vld [vmem:[%s1407_s28 + $0x8] sm:$0xff] }
  0x21   : > { %1265 = vmatpush3.msra.mxu0 %v1446_v11  ;;  %v585_v40 = vand.u32 4294901760, %v584_v32  ;;  %v592_v41 = vand.u32 4294901760, %v591_v33 }
  0x22   : > { %v524_v29 = vand.u32 4294901760, %v523_v23  ;;  %v534_v31 = vand.u32 4294901760, %v533_v25  ;;  %422 = vperm.xlu0 %1336, %v411_v21   ;;  %1269 = vmatprep.subr.mxu1 %v571_v34 }
  0x23   : > { %1280 = vmatprep.subr.mxu0 %v568_v15  ;;  %1270 = vmatpush3.msra.mxu1 %v571_v34 }
  0x24   : > { %v525_v35 = vsub.f32 %v523_v23, %v524_v29  ;;  %v535_v37 = vsub.f32 %v533_v25, %v534_v31  ;;  %1271 = vmatprep.subr.mxu1 %v578_v36 }
  0x25   : > { %1272 = vmatpush3.msra.mxu1 %v578_v36 }
  0x26   : > { %v526_v38 = vand.u32 4294901760, %v525_v35  ;;  %v536_v39 = vand.u32 4294901760, %v535_v37  ;;  %1273 = vmatprep.subr.mxu1 %v585_v40 }
  0x27   : > { %1274 = vmatpush3.msra.mxu1 %v585_v40 }
  0x28   : > { %1266 = vmatprep.mubr.f32.mxu0 %v526_v38  ;;  %1275 = vmatprep.subr.mxu1 %v592_v41 }
  0x29   : > { %1267 = vmatmul.mubr.f32.vlgmr.msra.gmra.mxu0 %v536_v39  ;;  %1276 = vmatpush3.msra.mxu1 %v592_v41  ;;  %v1215_v41 = vld [vmem:[%s383_s20] ss:$0 sm:$0xff] }
  0x2a   : > { %1281 = vmatpush3.msra.mxu0 %v568_v15  ;;  %1278 = vmatmul.mubr.f32.vlgmr.msra.gmra.mxu1 %v1457_v18 }
  0x2b   : > { %1282 = vmatprep.subr.mxu0 %v575_v17  ;;  %1291 = vmatprep.subr.mxu1 %v1436_v4 }
  0x2c   : > { %1283 = vmatpush3.msra.mxu0 %v575_v17  ;;  %1288 = vmatprep.mubr.f32.mxu0 %v523_v23 }
  0x2d   : > { %1284 = vmatprep.subr.mxu0 %v582_v19  ;;  %1292 = vmatpush3.msra.mxu1 %v1436_v4 }
  0x2e   : > { %1285 = vmatpush3.msra.mxu0 %v582_v19  ;;  %1293 = vmatprep.subr.mxu1 %v1438_v5 }
  0x2f   : > { %1286 = vmatprep.subr.mxu0 %v589_v20  ;;  %1294 = vmatpush3.msra.mxu1 %v1438_v5 }
  0x30   : > { %1287 = vmatpush3.msra.mxu0 %v589_v20  ;;  %1295 = vmatprep.subr.mxu1 %v1440_v6 }
  0x31   : > { %1289 = vmatmul.mubr.f32.vlgmr.msra.gmra.mxu0 %v533_v25  ;;  %1302 = vmatprep.subr.mxu0 %v569_v22 }
  0x32   : > { %1303 = vmatpush3.msra.mxu0 %v569_v22  ;;  %1296 = vmatpush3.msra.mxu1 %v1440_v6 }
  0x33   : > { %1304 = vmatprep.subr.mxu0 %v576_v24  ;;  %1297 = vmatprep.subr.mxu1 %v1446_v11 }
  0x34   : > { %1305 = vmatpush3.msra.mxu0 %v576_v24  ;;  %1298 = vmatpush3.msra.mxu1 %v1446_v11 }
  0x35   : > { %1306 = vmatprep.subr.mxu0 %v583_v26  ;;  %1299 = vmatprep.mubr.f32.mxu1 %v524_v29 }
  0x36   : > { %1307 = vmatpush3.msra.mxu0 %v583_v26  ;;  %1300 = vmatmul.mubr.f32.vlgmr.msra.gmra.mxu1 %v534_v31 }
  0x37   : > { %1308 = vmatprep.subr.mxu0 %v590_v27  ;;  %1313 = vmatprep.subr.mxu1 %v1436_v4 }
  0x38   : > { %1309 = vmatpush3.msra.mxu0 %v590_v27  ;;  %1310 = vmatprep.mubr.f32.mxu0 %v1454_v16 }
  0x39   : > { %1314 = vmatpush3.msra.mxu1 %v1436_v4  ;;  %1311 = vmatmul.mubr.f32.vlgmr.msra.gmra.mxu0 %v1457_v18  ;;  %v1211_v4 = vld [vmem:[%s360_s10] ss:$0 sm:$0xff] }
  0x3a   : > { %1315 = vmatprep.subr.mxu1 %v1438_v5  ;;  %1321 = vmatprep.mubr.f32.mxu1 %v1454_v16 }
  0x3b   : > { %1316 = vmatpush3.msra.mxu1 %v1438_v5 }
  0x3c   : > { %1317 = vmatprep.subr.mxu1 %v1440_v6 }
  0x3d   : > { %1318 = vmatpush3.msra.mxu1 %v1440_v6  ;;  %v412_v6 = vld [vmem:[%s1407_s28] sm:$0xff]  ;;  %s1360_s28 = smov 32  }
  0x3e   : > { %1319 = vmatprep.subr.mxu1 %v1446_v11 }
  0x3f   : > { %1320 = vmatpush3.msra.mxu1 %v1446_v11 }
  0x40   : > { %1322 = vmatmul.mubr.f32.vlgmr.msra.gmra.mxu1 %v1457_v18 }
  0x99   : > { %v418_v3 = vpop.permute.xlu0 %417 }
  0x9a   : > { %v431_v5 = vmul.f32 %v1211_v4, %v418_v3 }
  0x9c   : > { %v433_v10 = vadd.f32 %v431_v5, %v412_v6 }
  0x9d   : > { %v423_v7 = vpop.permute.xlu0 %422 }
  0x9e   : > { %v432_v11 = vmul.f32 %v1211_v4, %v423_v7 }
  0xa0   : > { %v434_v13 = vadd.f32 %v432_v11, %v413_v12 }
  0xe9   : > { %v1268_v42 = vpop.f32.mrf.mxu0 }
  0xea   : > { %v1279_v45 = vpop.f32.mrf.mxu1  ;;  %v539_v50 = vadd.f32 %v1268_v42, %v1212_v43 }
  0xeb   : > { %v528_v44 = vpop.f32.mrf.mxu0 }
  0xec   : > { %v529_v46 = vadd.f32 %v1212_v43, %v528_v44  ;;  %v629_v47 = vpop.f32.mrf.mxu1  ;;  %v636_v55 = vadd.f32 %v1279_v45, %v539_v50 }
  0xee   : > { %v630_v51 = vadd.f32 %v629_v47, %v529_v46 }
  0xf1   : > { %v1290_v48 = vpop.f32.mrf.mxu0 }
  0xf2   : > { %v723_v59 = vadd.f32 %v1290_v48, %v636_v55 }
  0xf3   : > { %v715_v52 = vpop.f32.mrf.mxu0 }
  0xf4   : > { %v716_v56 = vadd.f32 %v715_v52, %v630_v51  ;;  %v1216_v52 = vld [vmem:[%s390_s26] ss:$0 sm:$0xff] }
  0xf6   : > { %v1301_v49 = vpop.f32.mrf.mxu1 }
  0xf7   : > { %v808_v61 = vadd.f32 %v1301_v49, %v723_v59 }
  0xf8   : > { %v799_v53 = vpop.f32.mrf.mxu1 }
  0xf9   : > { %v1312_v54 = vpop.f32.mrf.mxu0  ;;  %v800_v57 = vadd.f32 %v799_v53, %v716_v56 }
  0xfa   : > { %v897_v1 = vadd.f32 %v1312_v54, %v808_v61 }
  0xfb   : > { %v890_v58 = vpop.f32.mrf.mxu0 }
  0xfc   : > { %v891_v62 = vadd.f32 %v890_v58, %v800_v57 }
 0x100   : > { %v1323_v60 = vpop.f32.mrf.mxu1 }
 0x101   : > { %v978_v2 = vadd.f32 %v1323_v60, %v897_v1 }
 0x102   : > { %v971_v63 = vpop.f32.mrf.mxu1 }
 0x103   : > { %v972_v0 = vadd.f32 %v971_v63, %v891_v62  ;;  %v982_v15 = vadd.f32 %v978_v2, %v434_v13 }
 0x105   : > { %997 = vrot.lane.b32.xlu1 %v972_v0, %s1359_s29  ;;  %v981_v14 = vadd.f32 %v972_v0, %v433_v10  ;;  %v1214_v17 = vmul.f32 -1.442695, %v982_v15 }
 0x107   : > { %v1213_v16 = vmul.f32 -1.442695, %v981_v14 }
 0x109   : > { %999 = vrot.lane.b32.xlu1 %v978_v2, %s1359_s29  ;;  %1337 = vpow2.f32 %v1213_v16 }
 0x10a   : > { %1339 = vpow2.f32 %v1214_v17 }
 0x116   : > { %v1338_v18 = vpop.eup %1337 }
 0x117   : > { %v989_v19 = vadd.f32 1.0, %v1338_v18  ;;  %v1340_v20 = vpop.eup %1339 }
 0x118   : > { %v990_v21 = vadd.f32 1.0, %v1340_v20 }
 0x119   : > { %1341 = vrcp.f32 %v989_v19 }
 0x11a   : > { %1343 = vrcp.f32 %v990_v21 }
 0x126   : > { %v1342_v22 = vpop.eup %1341 }
 0x127   : > { %v1344_v25 = vpop.eup %1343 }
 0x177   : > { %v998_v23 = vpop.permute.xlu1 %997 }
 0x178   : > { %v1003_v24 = vmul.f32 %v1342_v22, %v998_v23 }
 0x17a   : > { %1007 = vrot.lane.b32.xlu0 %v1003_v24, %s1359_s29 }
 0x17b   : > { %v1000_v26 = vpop.permute.xlu1 %999 }
 0x17c   : > { %v1004_v27 = vmul.f32 %v1344_v25, %v1000_v26 }
 0x17e   : > { %1009 = vrot.lane.b32.xlu1 %v1004_v27, %s1359_s29 }
 0x1ec   : > { %v1008_v28 = vpop.permute.xlu0 %1007 }
 0x1ed   : > { %v1013_v29 = vadd.f32 %v1008_v28, %v433_v10 }
 0x1ef   : > { %1345 = vtanh.f32 %v1013_v29 }
 0x1f0   : > { %v1010_v30 = vpop.permute.xlu1 %1009 }
 0x1f1   : > { %v1014_v31 = vadd.f32 %v1010_v30, %v434_v13 }
 0x1f3   : > { %1347 = vtanh.f32 %v1014_v31 }
 0x1fc   : > { %v1346_v32 = vpop.eup %1345 }
 0x1fd   : > { %1019 = vrot.lane.b32.xlu0 %v1346_v32, %s1359_s29 }
 0x200   : > { %v1348_v33 = vpop.eup %1347 }
 0x201   : > { %1021 = vrot.lane.b32.xlu1 %v1348_v33, %s1359_s29 }
 0x26f   : > { %v1020_v34 = vpop.permute.xlu0 %1019 }
 0x270   : > { %v1025_v35 = vsub.f32 %v1442_v8, %v1020_v34 }
 0x272   : > { %1029 = vrot.lane.b32.xlu0 %v1025_v35, %s1360_s28 }
 0x273   : > { %v1022_v36 = vpop.permute.xlu1 %1021 }
 0x274   : > { %v1026_v37 = vsub.f32 %v1444_v9, %v1022_v36 }
 0x276   : > { %1031 = vrot.lane.b32.xlu1 %v1026_v37, %s1360_s28 }
 0x2e4   : > { %v1030_v38 = vpop.permute.xlu0 %1029 }
 0x2e5   : > { %v1035_v39 = vmul.f32 %v1342_v22, %v1030_v38 }
 0x2e7   : > { %1039 = vrot.lane.b32.xlu0 %v1035_v39, %s1360_s28 }
 0x2e8   : > { %v1032_v40 = vpop.permute.xlu1 %1031 }
 0x2e9   : > { %v1036_v42 = vmul.f32 %v1344_v25, %v1032_v40 }
 0x2eb   : > { %1041 = vrot.lane.b32.xlu1 %v1036_v42, %s1360_s28  ;;  %1053 = vrot.lane.b32.xlu0 %v1215_v41, %s1359_s29 }
 0x359   : > { %v1040_v8 = vpop.permute.xlu0 %1039 }
 0x35a   : > { %v1045_v43 = vadd.f32 %v1346_v32, %v1040_v8 }
 0x35d   : > { %v1042_v44 = vpop.permute.xlu1 %1041  ;;  %v1054_v45 = vpop.permute.xlu0 %1053 }
 0x35e   : > { %v1046_v9 = vadd.f32 %v1348_v33, %v1042_v44  ;;  %v1056_v46 = vmul.f32 %v1054_v45, %v1045_v43 }
 0x360   : > { %v1057_v47 = vmul.f32 %v1054_v45, %v1046_v9  ;;  %1060 = vrot.lane.b32.xlu1 %v1056_v46, %s1359_s29 }
 0x362   : > { %1062 = vrot.lane.b32.xlu0 %v1057_v47, %s1359_s29 }
 0x3d2   : > { %v1061_v48 = vpop.permute.xlu1 %1060 }
 0x3d3   : > { %v1066_v49 = vsel %vm446_vm2, %v1061_v48, 0.0 }
 0x3d4   : > { %v1063_v50 = vpop.permute.xlu0 %1062  ;;  %1067 = vadd.xlane.f32.xlu1 %v1066_v49 }
 0x3d5   : > { %v1069_v51 = vsel %vm446_vm2, %v1063_v50, 0.0 }
 0x3d6   : > { %1070 = vadd.xlane.f32.xlu0 %v1069_v51 }
 0x3e5   : > { %1085 = vrot.lane.b32.xlu1 %v1046_v9, %s1359_s29 }
 0x3ec   : > { %1083 = vrot.lane.b32.xlu0 %v1045_v43, %s1359_s29 }
 0x45d   : > { %v1068_v53 = vpop.xlane.xlu1 %1067 }
 0x45e   : > { %v1079_v54 = vadd.f32 %v1216_v52, %v1068_v53 }
 0x45f   : > { %v1071_v55 = vpop.xlane.xlu0 %1070 }
 0x460   : > { %1092 = vst.msk [vmem:[#allocation3] sm:$0xff] %vm1091_vm3, %v1079_v54  ;;  %1094 = vst.msk [vmem:[%s1412_s7] sm:$0xff] %vm1091_vm3, %v1079_v54  ;;  %v1080_v56 = vadd.f32 %v1216_v52, %v1071_v55 }
 0x461   : > { %v1086_v57 = vpop.permute.xlu1 %1085 }
 0x462   : > { %1093 = vst.msk [vmem:[#allocation3 + $0x8] sm:$0xff] %vm1091_vm3, %v1080_v56  ;;  %1095 = vst.msk [vmem:[%s1412_s7 + $0x8] sm:$0xff] %vm1091_vm3, %v1080_v56 }
 0x463   : > { %1090 = vst.msk [vmem:[#allocation2 + $0x8] sm:$0xff] %vm446_vm2, %v1086_v57  ;;  %v1084_v58 = vpop.permute.xlu0 %1083 }
 0x464   : > { %1089 = vst.msk [vmem:[#allocation2] sm:$0xff] %vm446_vm2, %v1084_v58 }
 0x465 PF: > { %s16_s21 = sadd.s32 1, %s1355_s21  }
 0x466   : > { %p13_p7 = scmp.ge.s32.totalorder %s16_s21, 9  }
 0x468   :  { %15 = sbr.rel (!%p13_p7) target bundleno = 1 (0x1), region = 93 }

</bundles_post_ra>
